<compile_context>
chip_gen: v5e
topology: v5e:2x2
jax: 0.10.0
libtpu: 0.0.40
codegen_flags: <defaults>
</compile_context>

<pallas_src>
import jax
import jax.numpy as jnp
from jax.experimental import pallas as pl
from jax.experimental.pallas import tpu as pltpu


def _learnable_bias_kernel(x_ref, b_ref, o_ref):
    # x_ref: (tr, tl) tile of rows; b_ref: (tr, 1) per-row bias scalar.
    # The (tr, 1) operand broadcasts across the lane axis on the VPU.
    o_ref[...] = x_ref[...] + b_ref[...]


def _round_up(a, b):
    return ((a + b - 1) // b) * b


def learnable_bias(x_nchw: jax.Array, bias: jax.Array) -> jax.Array:
    """Equivalent of LearnableBias.forward: x + bias.expand_as(x).

    x_nchw: (N, C, H, W)
    bias:   (1, C, 1, 1)  (PyTorch parameter shape)
    """
    N, C, H, W = x_nchw.shape
    assert bias.shape == (1, C, 1, 1)
    R = N * C          # row-stream length (one row per (n, c))
    L = H * W          # lane extent (contiguous spatial)
    dtype = x_nchw.dtype
    itemsize = jnp.dtype(dtype).itemsize

    # Sublane packing of the second-to-last dim: 8 (f32), 16 (bf16), 32 (i8).
    sublane = max(8, 32 // itemsize)

    # Flatten to a contiguous row stream (free metadata reshape); one bias
    # scalar per (n, c) row.  b2 is tiny (R elements) -> negligible traffic.
    x2 = x_nchw.reshape(R, L)
    b2 = jnp.tile(bias.reshape(C).astype(dtype), N).reshape(R, 1)

    # ---- lane (last-dim) tile ---------------------------------------------
    MAX_TL = 2048                        # bounds per-row VMEM bytes for wide rows
    tl = min(MAX_TL, _round_up(L, 128))  # multiple of 128 (ragged last block OK)
    if tl >= L:
        tl = L                           # full extent: always a legal block
    n_lane = pl.cdiv(L, tl)

    # ---- row tile -----------------------------------------------------------
    # ~4 MiB per x tile, budgeted with the lane-PADDED width (VMEM pads the
    # last dim to a multiple of 128).  Cap tr at 4096 so each lane-padded
    # (tr, 1) bias buffer stays <= 2 MiB.
    TILE_BYTES = 4 * 1024 * 1024
    tl_pad = _round_up(tl, 128)
    tr = (TILE_BYTES // (tl_pad * itemsize)) // sublane * sublane
    tr = max(sublane, min(tr, 4096))

    # Prefer >= ~8 total grid steps when the data allows it: keeps the DMA
    # pipeline overlapped and feeds both TensorCores on v7x.
    MIN_STEPS = 8
    row_tiles_wanted = max(1, pl.cdiv(MIN_STEPS, n_lane))
    tr = min(tr, _round_up(pl.cdiv(R, row_tiles_wanted), sublane))
    if tr >= R:
        tr = R                           # full extent: always a legal block
    n_row = pl.cdiv(R, tr)

    grid = (n_row, n_lane)

    cost = pl.CostEstimate(
        flops=R * L,
        transcendentals=0,
        bytes_accessed=(2 * R * L + R) * itemsize,
    )

    out = pl.pallas_call(
        _learnable_bias_kernel,
        out_shape=jax.ShapeDtypeStruct((R, L), dtype),
        grid_spec=pltpu.PrefetchScalarGridSpec(
            num_scalar_prefetch=0,
            grid=grid,
            in_specs=[
                pl.BlockSpec((tr, tl), lambda i, j: (i, j)),
                pl.BlockSpec((tr, 1), lambda i, j: (i, 0)),
            ],
            out_specs=pl.BlockSpec((tr, tl), lambda i, j: (i, j)),
        ),
        compiler_params=pltpu.CompilerParams(
            dimension_semantics=("parallel", "parallel"),
            vmem_limit_bytes=48 * 1024 * 1024,
        ),
        cost_estimate=cost,
    )(x2, b2)

    return out.reshape(N, C, H, W)


if __name__ == "__main__":
    key = jax.random.PRNGKey(0)
    kx, kb = jax.random.split(key)

    N, C, H, W = 2, 4, 16, 16
    x = jax.random.normal(kx, (N, C, H, W), dtype=jnp.float32)

    # Module init is zeros(1, C, 1, 1); use small deterministic nonzero values
    # so the broadcast path is actually exercised.
    bias = 0.01 * jax.random.normal(kb, (1, C, 1, 1), dtype=jnp.float32)

    out = jax.block_until_ready(learnable_bias(x, bias))
    ref = x + jnp.broadcast_to(bias, x.shape)
    assert out.shape == x.shape and out.dtype == x.dtype
    assert jnp.allclose(out, ref, atol=1e-6, rtol=1e-6)

    # Extra small shapes exercising ragged row / lane boundary blocks
    # (no wrapper-side padding or slicing anywhere).
    for (n, c, h, w) in [(4, 13, 9, 9), (1, 2, 50, 50)]:
        kx2, kb2 = jax.random.split(jax.random.PRNGKey(n * 100 + c))
        x_t = jax.random.normal(kx2, (n, c, h, w), dtype=jnp.float32)
        b_t = 0.01 * jax.random.normal(kb2, (1, c, 1, 1), dtype=jnp.float32)
        o_t = jax.block_until_ready(learnable_bias(x_t, b_t))
        r_t = x_t + jnp.broadcast_to(b_t, x_t.shape)
        assert o_t.shape == x_t.shape and o_t.dtype == x_t.dtype
        assert jnp.allclose(o_t, r_t, atol=1e-6, rtol=1e-6)

    print("KERNEL_OK")
</pallas_src>

<mosaic_0001>
module attributes {stable_mosaic.version = 11 : i64} {
  func.func @_learnable_bias_kernel(%arg0: i32, %arg1: i32, %arg2: memref<8x256xf32, #tpu.memory_space<vmem>>, %arg3: memref<8x1xf32, #tpu.memory_space<vmem>>, %arg4: memref<8x256xf32, #tpu.memory_space<vmem>>) attributes {dimension_semantics = [#tpu.dimension_semantics<parallel>, #tpu.dimension_semantics<parallel>], iteration_bounds = array<i64: 1, 1>, scalar_prefetch = 0 : i64, scratch_operands = 0 : i64, tpu.core_type = #tpu.core_type<tc>, window_params = [{transform_indices = @transform_0, window_bounds = array<i64: 8, 256>}, {transform_indices = @transform_1, window_bounds = array<i64: 8, 1>}, {transform_indices = @transform_2, window_bounds = array<i64: 8, 256>}]} {
    %c0 = arith.constant 0 : index
    %c0_0 = arith.constant 0 : index
    %0 = vector.load %arg2[%c0, %c0_0] : memref<8x256xf32, #tpu.memory_space<vmem>>, vector<8x256xf32>
    %c0_1 = arith.constant 0 : index
    %c0_2 = arith.constant 0 : index
    %1 = vector.load %arg3[%c0_1, %c0_2] : memref<8x1xf32, #tpu.memory_space<vmem>>, vector<8x1xf32>
    %2 = vector.broadcast %1 : vector<8x1xf32> to vector<8x256xf32>
    %3 = arith.addf %0, %2 : vector<8x256xf32>
    %c0_3 = arith.constant 0 : index
    %c0_4 = arith.constant 0 : index
    %4 = vector.load %arg4[%c0_3, %c0_4] : memref<8x256xf32, #tpu.memory_space<vmem>>, vector<8x256xf32>
    tpu.vector_store %arg4[%c0_3, %c0_4], %3 {strides = array<i32>} : memref<8x256xf32, #tpu.memory_space<vmem>>, vector<8x256xf32>,
    return
  }
  func.func @transform_0(%arg0: i32, %arg1: i32) -> (i32, i32) {
    %c0_i32 = arith.constant 0 : i32
    return %arg0, %arg1 : i32, i32
  }
  func.func @transform_1(%arg0: i32, %arg1: i32) -> (i32, i32) {
    %c0_i32 = arith.constant 0 : i32
    %c0_i32_0 = arith.constant 0 : i32
    return %arg0, %c0_i32 : i32, i32
  }
  func.func @transform_2(%arg0: i32, %arg1: i32) -> (i32, i32) {
    %c0_i32 = arith.constant 0 : i32
    return %arg0, %arg1 : i32, i32
  }
}

</mosaic_0001>

<bundles_post_ra>
// kernel: tpu_custom_call.1
= control target key start
LH: loop header
LB: loop body
LE: loop exit
PB: predicated region body
PF: predicated region fallthrough
CT: control target
= control target key end

     0   :  { %7 = vsyncpa [#allocation3], 0  ;;  %s138_s0 = inlined_call_operand.hbm [shape: f32[8,256], index: 0, kind: input, shape index: {}]   ;;  %s139_s1 = inlined_call_operand.vmem [shape: f32[8,1], index: 1, kind: input, shape index: {}]   ;;  %s140_s2 = inlined_call_operand.hbm [shape: f32[8,256], index: 2, kind: output, shape index: {}]  }
   0x1   :  { %8 = vsyncpa [#allocation4], 0  ;;  %s14_s11 = sshll.u32 %s138_s0, 4  ;;  %s111_s12 = smov [#allocation2]   ;;  %s15_s11 = int_to_ptr.hbm [resolvable:$true] %s14_s11 }
   0x2   :  { %s16_s13 = sshll.u32 %s111_s12, 4  ;;  %s17_s13 = int_to_ptr.vmem [resolvable:$true] %s16_s13 }
   0x3   :  { %19 = dma.hbm_to_vmem [thread:$0]  %s15_s11, 256, %s17_s13, [#allocation3]  }
   0x4   :  { %107 = dma.done.wait [#allocation3], 256  }
   0x5   :  { %108 = vsyncadd [#allocation3], 4294967040  ;;  %v112_v0 = vmov 0   ;;  %v28_v1 = vld [vmem:[%s139_s1] sm:$0xff]  ;;  %v27_v3 = vld [vmem:[#allocation2 + $0x8] sm:$0xff]  ;;  %s113_s16 = smov [#allocation5]  }
   0x6   :  { %58 = vset.pattern.permute.xlu0 %v112_v0  ;;  %v26_v2 = vld [vmem:[#allocation2] sm:$0xff]  ;;  %s43_s17 = sshll.u32 %s113_s16, 4  ;;  %s45_s19 = sshll.u32 %s140_s2, 4  ;;  %s44_s17 = int_to_ptr.vmem [resolvable:$true] %s43_s17  ;;  %s46_s19 = int_to_ptr.hbm [resolvable:$true] %s45_s19 }
   0x7   :  { %31 = vperm.xlu0 %58, %v28_v1  }
  0x79   :  { %v32_v4 = vpop.permute.xlu0 %31 }
  0x7a   :  { %v34_v5 = vadd.f32 %v32_v4, %v26_v2  ;;  %v35_v6 = vadd.f32 %v32_v4, %v27_v3 }
  0x7c   :  { %36 = vst [vmem:[#allocation5] sm:$0xff] %v34_v5 }
  0x7d   :  { %37 = vst [vmem:[#allocation5 + $0x8] sm:$0xff] %v35_v6 }
  0x7e   :  { %48 = dma.vmem_to_hbm [thread:$0]  %s44_s17, 256, %s46_s19, [#allocation4]  }
  0x7f   :  { %109 = dma.done.wait [#allocation4], 256  }
  0x80   :  { %110 = vsyncadd [#allocation4], 4294967040 }
  0x81   :  { %53 = vsyncpa [#allocation3], 1 }
  0x82   :  { %54 = vsyncpa [#allocation4], 1 }

</bundles_post_ra>
